<compile_context>
chip_gen: v6e
topology: v6e:2x2x1
jax: 0.10.0
libtpu: 0.0.40
codegen_flags: <defaults>
</compile_context>

<pallas_src>
import functools

import jax
import jax.numpy as jnp
from jax.experimental import pallas as pl
from jax.experimental.pallas import tpu as pltpu


def _round_up(x, m):
    return (x + m - 1) // m * m


def _hw_budget():
    """Generation-dispatched tile / VMEM budgets (conservative fallback)."""
    try:
        kind = jax.devices()[0].device_kind.lower()
    except Exception:
        kind = ""
    if "v7" in kind:
        # 64 MiB VMEM per TC, 2 TCs/chip, 3.2 TB/s HBM: cap the working set.
        return dict(tm_pref=256, tn_pref=256, tk_pref=1024,
                    vmem_limit=48 * 1024 * 1024, num_cores=2)
    if "v6" in kind or "v5" in kind:
        # 128 MiB VMEM, 1 TC (v5e/v6e): bigger tiles toward the HBM roofline.
        return dict(tm_pref=512, tn_pref=512, tk_pref=2048,
                    vmem_limit=64 * 1024 * 1024, num_cores=1)
    return dict(tm_pref=256, tn_pref=256, tk_pref=1024,
                vmem_limit=32 * 1024 * 1024, num_cores=1)


def _pick_tile(dim, pref, align):
    """Largest tile <= pref that is a multiple of `align` and divides `dim`."""
    assert dim % align == 0, (dim, align)
    t = min(pref, dim)
    t = max(align, (t // align) * align)
    while dim % t:
        t -= align
    return t


def _select_tiles(m, k, n, a_bytes, b_bytes, out_bytes, budget):
    tn = _pick_tile(n, budget["tn_pref"], 128)
    tm = _pick_tile(m, budget["tm_pref"], 16)

    # v7x: make sure the 'parallel' row axis has >= num_cores blocks so both
    # TensorCores get work (otherwise one core idles).
    if budget["num_cores"] > 1:
        while ((m // tm) * (n // tn) < budget["num_cores"]
               and tm >= 32 and (tm // 2) % 16 == 0):
            tm //= 2

    def wset(tk_):
        # Double-buffered input tiles + output tile + f32 accumulator + bias.
        return (2 * tm * tk_ * a_bytes + 2 * tk_ * tn * b_bytes
                + 2 * tm * tn * out_bytes + tm * tn * 4 + 2 * tn * 4)

    # Resident B panel: if the full (k x tn) panel fits comfortably, DMA it
    # once and stream only A row tiles (reduction axis collapses to 1 step).
    if wset(k) <= budget["vmem_limit"] // 2:
        tk = k
    else:
        tk = _pick_tile(k, budget["tk_pref"], 128)
        while tk > 128 and wset(tk) > budget["vmem_limit"] // 2:
            tk = _pick_tile(k, tk // 2, 128)
    while tm > 16 and wset(tk) > budget["vmem_limit"] // 2:
        tm = _pick_tile(m, max(16, tm // 2), 16)
    return tm, tn, tk


def _matmul_kernel(a_ref, b_ref, bias_ref, o_ref, acc_ref, *, apply_relu):
    # Accumulating tiled matmul: o = a @ b + bias (+ relu), f32 accumulation.
    @pl.when(pl.program_id(2) == 0)
    def _():
        acc_ref[...] = jnp.zeros_like(acc_ref)

    acc_ref[...] += jnp.dot(
        a_ref[...], b_ref[...], preferred_element_type=jnp.float32
    )

    @pl.when(pl.program_id(2) == pl.num_programs(2) - 1)
    def _():
        out = acc_ref[...] + bias_ref[...]  # bias is zeros when unused
        if apply_relu:
            out = jnp.maximum(out, 0.0)
        o_ref[...] = out.astype(o_ref.dtype)


def pallas_matmul(a, b, bias=None, *, apply_relu=False,
                  out_dtype=jnp.float32, budget=None):
    """Tiled `a @ b (+ bias, + relu)` on pre-padded, tile-aligned operands.

    Operands must already be padded: m % 16 == 0, k % 128 == 0, n % 128 == 0.
    Returns the full padded (m, n) result in `out_dtype` (no slicing here, so
    downstream kernels consume it directly).
    """
    if budget is None:
        budget = _hw_budget()
    m, k = a.shape
    k2, n = b.shape
    assert k == k2, (a.shape, b.shape)
    assert m % 16 == 0 and k % 128 == 0 and n % 128 == 0, (a.shape, b.shape)

    if bias is None:
        bias = jnp.zeros((1, n), jnp.float32)
    else:
        bias = bias.reshape(1, n).astype(jnp.float32)

    tm, tn, tk = _select_tiles(
        m, k, n, a.dtype.itemsize, b.dtype.itemsize,
        jnp.dtype(out_dtype).itemsize, budget)
    grid = (m // tm, n // tn, k // tk)

    kernel = functools.partial(_matmul_kernel, apply_relu=apply_relu)
    return pl.pallas_call(
        kernel,
        out_shape=jax.ShapeDtypeStruct((m, n), out_dtype),
        grid=grid,
        in_specs=[
            pl.BlockSpec((tm, tk), lambda i, j, kk: (i, kk)),
            pl.BlockSpec((tk, tn), lambda i, j, kk: (kk, j)),
            pl.BlockSpec((1, tn), lambda i, j, kk: (0, j)),
        ],
        out_specs=pl.BlockSpec((tm, tn), lambda i, j, kk: (i, j)),
        scratch_shapes=[pltpu.VMEM((tm, tn), jnp.float32)],
        compiler_params=pltpu.CompilerParams(
            dimension_semantics=("parallel", "parallel", "arbitrary"),
            vmem_limit_bytes=budget["vmem_limit"],
        ),
    )(a, b, bias)


def gcn_layer(a_hat_pad, x_pad, w_pad, b_pad, *, apply_relu, budget,
              out_dtype=jnp.bfloat16):
    """One GCNConv on pre-padded bf16 operands: A_hat @ (X @ W) + b (+ relu).

    Order chosen by padded widths so the N x N aggregation matmul runs on the
    narrower feature panel; bias + ReLU are fused into the second matmul.
    """
    f_in_pad, f_out_pad = w_pad.shape
    if f_out_pad <= f_in_pad:
        xw = pallas_matmul(x_pad, w_pad, out_dtype=jnp.bfloat16, budget=budget)
        return pallas_matmul(a_hat_pad, xw, bias=b_pad, apply_relu=apply_relu,
                             out_dtype=out_dtype, budget=budget)
    else:
        ax = pallas_matmul(a_hat_pad, x_pad, out_dtype=jnp.bfloat16,
                           budget=budget)
        return pallas_matmul(ax, w_pad, bias=b_pad, apply_relu=apply_relu,
                             out_dtype=out_dtype, budget=budget)


def normalized_adjacency(edge_index, num_nodes):
    # Glue (plain JAX): dense A_hat = D^{-1/2} (A + I) D^{-1/2},
    # A[target, source] = 1 per edge, matching torch_geometric's gcn_norm.
    src, dst = edge_index[0], edge_index[1]
    a = jnp.zeros((num_nodes, num_nodes), jnp.float32)
    a = a.at[dst, src].add(1.0)
    a = a + jnp.eye(num_nodes, dtype=jnp.float32)
    deg = a.sum(axis=1)
    dinv = jnp.where(deg > 0, jax.lax.rsqrt(deg), 0.0)
    return dinv[:, None] * a * dinv[None, :]


def init_params(key, in_channels, hidden_channels, out_channels):
    k1, k2 = jax.random.split(key)
    s1 = (6.0 / (in_channels + hidden_channels)) ** 0.5
    s2 = (6.0 / (hidden_channels + out_channels)) ** 0.5
    return {
        "w1": jax.random.uniform(k1, (in_channels, hidden_channels),
                                 jnp.float32, -s1, s1),
        "b1": jnp.zeros((hidden_channels,), jnp.float32),
        "w2": jax.random.uniform(k2, (hidden_channels, out_channels),
                                 jnp.float32, -s2, s2),
        "b2": jnp.zeros((out_channels,), jnp.float32),
    }


def gcn_forward(x, edge_index, params):
    n, f_in = x.shape
    f_hid = params["w1"].shape[1]
    f_out = params["w2"].shape[1]
    budget = _hw_budget()

    # --- Hoisted padding / casting: exactly once per operand per forward ---
    n_pad = _round_up(n, 128)
    f_in_pad = _round_up(f_in, 128)
    f_hid_pad = _round_up(f_hid, 128)
    f_out_pad = _round_up(f_out, 128)

    a_hat = normalized_adjacency(edge_index, n)
    # TODO(synk): keep A_hat in f32 (or fp8 on v7x) if bf16 rounding of the
    # D^-1/2 normalization hurts accuracy on high-degree graphs.
    a_hat_pad = jnp.zeros((n_pad, n_pad), jnp.bfloat16).at[:n, :n].set(
        a_hat.astype(jnp.bfloat16))
    x_pad = jnp.zeros((n_pad, f_in_pad), jnp.bfloat16).at[:n, :f_in].set(
        x.astype(jnp.bfloat16))
    w1_pad = jnp.zeros((f_in_pad, f_hid_pad), jnp.bfloat16).at[
        :f_in, :f_hid].set(params["w1"].astype(jnp.bfloat16))
    b1_pad = jnp.zeros((1, f_hid_pad), jnp.float32).at[0, :f_hid].set(
        params["b1"].astype(jnp.float32))
    w2_pad = jnp.zeros((f_hid_pad, f_out_pad), jnp.bfloat16).at[
        :f_hid, :f_out].set(params["w2"].astype(jnp.bfloat16))
    b2_pad = jnp.zeros((1, f_out_pad), jnp.float32).at[0, :f_out].set(
        params["b2"].astype(jnp.float32))

    # Layer 1: padded bf16 output, consumed directly by layer 2 (no re-pad).
    h_pad = gcn_layer(a_hat_pad, x_pad, w1_pad, b1_pad,
                      apply_relu=True, budget=budget, out_dtype=jnp.bfloat16)
    # Layer 2: final logits in f32; single slice at the very end.
    o_pad = gcn_layer(a_hat_pad, h_pad, w2_pad, b2_pad,
                      apply_relu=False, budget=budget, out_dtype=jnp.float32)
    return o_pad[:n, :f_out]


def gcn_forward_ref(x, edge_index, params):
    # Pure-JAX f32 reference for correctness checking.
    a_hat = normalized_adjacency(edge_index, x.shape[0])
    h = jnp.maximum(a_hat @ (x @ params["w1"]) + params["b1"], 0.0)
    return a_hat @ (h @ params["w2"]) + params["b2"]


if __name__ == "__main__":
    num_nodes, in_channels, hidden_channels, out_channels = 16, 4, 32, 8

    key = jax.random.PRNGKey(0)
    kx, kp = jax.random.split(key)
    x = jax.random.normal(kx, (num_nodes, in_channels), jnp.float32)

    # Deterministic ring graph (undirected -> both directions), 32 edges.
    idx = jnp.arange(num_nodes, dtype=jnp.int32)
    nxt = (idx + 1) % num_nodes
    edge_index = jnp.stack(
        [jnp.concatenate([idx, nxt]), jnp.concatenate([nxt, idx])], axis=0
    )

    params = init_params(kp, in_channels, hidden_channels, out_channels)

    out = gcn_forward(x, edge_index, params)
    out = jax.block_until_ready(out)

    ref = gcn_forward_ref(x, edge_index, params)
    assert out.shape == (num_nodes, out_channels)
    # bf16 operands (f32 accumulation) -> slightly loosened tolerance vs f32 ref.
    assert jnp.allclose(out, ref, atol=3e-2, rtol=3e-2), (
        float(jnp.max(jnp.abs(out - ref))))

    print("KERNEL_OK")
</pallas_src>

<mosaic_0001>
module attributes {stable_mosaic.version = 11 : i64} {
  func.func @_matmul_kernel(%arg0: i32, %arg1: i32, %arg2: i32, %arg3: memref<128x128xbf16, #tpu.memory_space<vmem>>, %arg4: memref<128x128xbf16, #tpu.memory_space<vmem>>, %arg5: memref<1x128xf32, #tpu.memory_space<vmem>>, %arg6: memref<128x128xbf16, #tpu.memory_space<vmem>>, %arg7: memref<128x128xf32, #tpu.memory_space<vmem>>) attributes {dimension_semantics = [#tpu.dimension_semantics<parallel>, #tpu.dimension_semantics<parallel>, #tpu.dimension_semantics<arbitrary>], iteration_bounds = array<i64: 1, 1, 1>, scalar_prefetch = 0 : i64, scratch_operands = 1 : i64, tpu.core_type = #tpu.core_type<tc>, window_params = [{transform_indices = @transform_0, window_bounds = array<i64: 128, 128>}, {transform_indices = @transform_1, window_bounds = array<i64: 128, 128>}, {transform_indices = @transform_2, window_bounds = array<i64: 1, 128>}, {transform_indices = @transform_3, window_bounds = array<i64: 128, 128>}]} {
    %c0_i32 = arith.constant 0 : i32
    %0 = arith.cmpi eq, %arg2, %c0_i32 : i32
    %1 = arith.extui %0 : i1 to i32
    %c0_i32_0 = arith.constant 0 : i32
    %2 = arith.cmpi ne, %1, %c0_i32_0 : i32
    scf.if %2 {
      %cst_10 = arith.constant 0.000000e+00 : f32
      %12 = vector.broadcast %cst_10 : f32 to vector<128x128xf32>
      %c0_11 = arith.constant 0 : index
      %c0_12 = arith.constant 0 : index
      %13 = vector.load %arg7[%c0_11, %c0_12] : memref<128x128xf32, #tpu.memory_space<vmem>>, vector<128x128xf32>
      tpu.vector_store %arg7[%c0_11, %c0_12], %12 {strides = array<i32>} : memref<128x128xf32, #tpu.memory_space<vmem>>, vector<128x128xf32>,
    } else {
    }
    %c0 = arith.constant 0 : index
    %c0_1 = arith.constant 0 : index
    %3 = vector.load %arg7[%c0, %c0_1] : memref<128x128xf32, #tpu.memory_space<vmem>>, vector<128x128xf32>
    %c0_2 = arith.constant 0 : index
    %c0_3 = arith.constant 0 : index
    %4 = vector.load %arg3[%c0_2, %c0_3] : memref<128x128xbf16, #tpu.memory_space<vmem>>, vector<128x128xbf16>
    %c0_4 = arith.constant 0 : index
    %c0_5 = arith.constant 0 : index
    %5 = vector.load %arg4[%c0_4, %c0_5] : memref<128x128xbf16, #tpu.memory_space<vmem>>, vector<128x128xbf16>
    %cst = arith.constant dense<0.000000e+00> : vector<128x128xf32>
    %6 = tpu.matmul %4, %5, %cst {dimension_numbers = #tpu.dot_dimension_numbers<[1], [0], [0], [1], [0, 0, 1, 1], [], []>} : vector<128x128xbf16>, vector<128x128xbf16>, vector<128x128xf32> -> vector<128x128xf32>
    %7 = arith.addf %3, %6 : vector<128x128xf32>
    %c0_6 = arith.constant 0 : index
    %c0_7 = arith.constant 0 : index
    %8 = vector.load %arg7[%c0_6, %c0_7] : memref<128x128xf32, #tpu.memory_space<vmem>>, vector<128x128xf32>
    tpu.vector_store %arg7[%c0_6, %c0_7], %7 {strides = array<i32>} : memref<128x128xf32, #tpu.memory_space<vmem>>, vector<128x128xf32>,
    %c0_i32_8 = arith.constant 0 : i32
    %9 = arith.cmpi eq, %arg2, %c0_i32_8 : i32
    %10 = arith.extui %9 : i1 to i32
    %c0_i32_9 = arith.constant 0 : i32
    %11 = arith.cmpi ne, %10, %c0_i32_9 : i32
    scf.if %11 {
      %c0_10 = arith.constant 0 : index
      %c0_11 = arith.constant 0 : index
      %12 = vector.load %arg7[%c0_10, %c0_11] : memref<128x128xf32, #tpu.memory_space<vmem>>, vector<128x128xf32>
      %c0_12 = arith.constant 0 : index
      %c0_13 = arith.constant 0 : index
      %13 = vector.load %arg5[%c0_12, %c0_13] : memref<1x128xf32, #tpu.memory_space<vmem>>, vector<1x128xf32>
      %14 = vector.broadcast %13 : vector<1x128xf32> to vector<128x128xf32>
      %15 = arith.addf %12, %14 : vector<128x128xf32>
      %16 = arith.truncf %15 : vector<128x128xf32> to vector<128x128xbf16>
      %c0_14 = arith.constant 0 : index
      %c0_15 = arith.constant 0 : index
      %17 = vector.load %arg6[%c0_14, %c0_15] : memref<128x128xbf16, #tpu.memory_space<vmem>>, vector<128x128xbf16>
      tpu.vector_store %arg6[%c0_14, %c0_15], %16 {strides = array<i32>} : memref<128x128xbf16, #tpu.memory_space<vmem>>, vector<128x128xbf16>,
    } else {
    }
    return
  }
  func.func @transform_0(%arg0: i32, %arg1: i32, %arg2: i32) -> (i32, i32) {
    %c0_i32 = arith.constant 0 : i32
    return %arg0, %arg2 : i32, i32
  }
  func.func @transform_1(%arg0: i32, %arg1: i32, %arg2: i32) -> (i32, i32) {
    %c0_i32 = arith.constant 0 : i32
    return %arg2, %arg1 : i32, i32
  }
  func.func @transform_2(%arg0: i32, %arg1: i32, %arg2: i32) -> (i32, i32) {
    %c0_i32 = arith.constant 0 : i32
    %c0_i32_0 = arith.constant 0 : i32
    return %c0_i32, %arg1 : i32, i32
  }
  func.func @transform_3(%arg0: i32, %arg1: i32, %arg2: i32) -> (i32, i32) {
    %c0_i32 = arith.constant 0 : i32
    return %arg0, %arg1 : i32, i32
  }
}

</mosaic_0001>

<bundles_post_ra>
// kernel: tpu_custom_call.1
= control target key start
LH: loop header
LB: loop body
LE: loop exit
PB: predicated region body
PF: predicated region fallthrough
CT: control target
= control target key end

     0   :  { %8 = vsyncpa [#allocation4], 0  ;;  %s770_s0 = inlined_call_operand.hbm [shape: bf16[128,128], index: 0, kind: input, shape index: {}]   ;;  %s771_s1 = inlined_call_operand.hbm [shape: bf16[128,128], index: 1, kind: input, shape index: {}]   ;;  %s772_s2 = inlined_call_operand.vmem [shape: f32[1,128], index: 2, kind: input, shape index: {}]   ;;  %s773_s3 = inlined_call_operand.hbm [shape: bf16[128,128], index: 3, kind: output, shape index: {}]  }
   0x1   :  { %9 = vsyncpa [#allocation7], 0 }
   0x2   :  { %10 = vsyncpa [#allocation5], 0  ;;  %s724_s12 = smov [#allocation3]  }
   0x3   :  { %s16_s13 = sshll.u32 %s724_s12, 4  ;;  %s17_s13 = int_to_ptr.vmem [resolvable:$true] %s16_s13 }
   0x4   :  { %s666_s14 = scalar_lea.vmem %s17_s13, 1024  ;;  %p671_p1 = scmp.lt.s32.totalorder %s17_s13, %s17_s13 }
   0x5   :  { %p667_p0 = scmp.ne.s32.totalorder %s17_s13, %s666_s14  ;;  %p672_p2 = scmp.lt.s32.totalorder %s666_s14, %s666_s14 }
   0x7   :  { %p673_p3 = por %p672_p2, %p671_p1 }
   0x9   :  { %p674_p4 = pnand %p673_p3, %p667_p0 }
   0xb   :  { %677 = shalt.err (!%p674_p4)
}
   0xc   :  { %s725_s15 = smov 64   ;;  %s726_s16 = smov 4  }
   0xd   :  { %22 = dma.hbm_to_vmem [thread:$0]  %s770_s0, 1024, %s17_s13, [#allocation4], %s725_s15, %s725_s15, %s726_s16  }
   0xe   :  { %s727_s19 = smov [#allocation6]  }
   0xf   :  { %s28_s20 = sshll.u32 %s727_s19, 4  ;;  %s29_s20 = int_to_ptr.vmem [resolvable:$true] %s28_s20 }
  0x10   :  { %s686_s21 = scalar_lea.vmem %s29_s20, 1024  ;;  %p691_p6 = scmp.lt.s32.totalorder %s29_s20, %s29_s20 }
  0x11   :  { %p687_p5 = scmp.ne.s32.totalorder %s29_s20, %s686_s21  ;;  %p692_p7 = scmp.lt.s32.totalorder %s686_s21, %s686_s21 }
  0x13   :  { %p693_p8 = por %p692_p7, %p691_p6 }
  0x15   :  { %p694_p9 = pnand %p693_p8, %p687_p5 }
  0x17   :  { %697 = shalt.err (!%p694_p9)
}
  0x18   :  { %34 = dma.hbm_to_vmem [thread:$0]  %s771_s1, 1024, %s29_s20, [#allocation7], %s725_s15, %s725_s15, %s726_s16  }
  0x19   :  { %718 = dma.done.wait [#allocation4], 1024  }
  0x1a   :  { %719 = vsyncadd [#allocation4], 4294966272 }
  0x1b   :  { %720 = dma.done.wait [#allocation7], 1024  }
  0x1c   :  { %721 = vsyncadd [#allocation7], 4294966272  ;;  %v642_v0 = vld [vmem:[#allocation6 + $0x38] sm:$0xff]   ;;  %v643_v1 = vld [vmem:[#allocation6 + $0x30] sm:$0xff]  }
  0x1d   :  { %589 = vmatprep.subr.bf16.mxu0 %v642_v0  ;;  %621 = vmatprep.subr.bf16.mxu1 %v642_v0  ;;  %v644_v2 = vld [vmem:[#allocation6 + $0x28] sm:$0xff]   ;;  %v645_v3 = vld [vmem:[#allocation6 + $0x20] sm:$0xff]   ;;  %v646_v6 = vld [vmem:[#allocation6 + $0x18] sm:$0xff]  }
  0x1e   :  { %590 = vmatpush3.bf16.msra.mxu0 %v642_v0  ;;  %629 = vmatpush3.bf16.msra.mxu1 %v642_v0  ;;  %v650_v4 = vld [vmem:[#allocation3] sm:$0xff]   ;;  %v647_v7 = vld [vmem:[#allocation6 + $0x10] sm:$0xff]   ;;  %v648_v8 = vld [vmem:[#allocation6 + $0x8] sm:$0xff]  }
  0x1f   :  { %591 = vmatprep.subr.bf16.mxu0 %v643_v1  ;;  %622 = vmatprep.subr.bf16.mxu1 %v643_v1  ;;  %v651_v5 = vld [vmem:[#allocation3 + $0x20] sm:$0xff]   ;;  %v652_v10 = vld [vmem:[#allocation3 + $0x8] sm:$0xff]   ;;  %v654_v12 = vld [vmem:[#allocation3 + $0x10] sm:$0xff]  }
  0x20   :  { %605 = vmatprep.mubr.bf16.mxu0 %v650_v4  ;;  %613 = vmatprep.mubr.bf16.mxu1 %v651_v5  ;;  %v649_v9 = vld [vmem:[#allocation6] sm:$0xff]   ;;  %v653_v11 = vld [vmem:[#allocation3 + $0x28] sm:$0xff]   ;;  %v655_v13 = vld [vmem:[#allocation3 + $0x30] sm:$0xff]  }
  0x21   :  { %v656_v14 = vld [vmem:[#allocation3 + $0x18] sm:$0xff]   ;;  %v493_v18 = vld [vmem:[%s772_s2] ss:$0 sm:$0xff]  ;;  %s728_s2 = smov [#allocation8]  }
  0x22   :  { %592 = vmatpush3.bf16.msra.mxu0 %v643_v1  ;;  %630 = vmatpush3.bf16.msra.mxu1 %v643_v1  ;;  %v657_v15 = vld [vmem:[#allocation3 + $0x38] sm:$0xff]   ;;  %s464_s24 = sshll.u32 %s728_s2, 4  ;;  %s465_s24 = int_to_ptr.vmem [resolvable:$true] %s464_s24 }
  0x23   :  { %593 = vmatprep.subr.bf16.mxu0 %v644_v2  ;;  %623 = vmatprep.subr.bf16.mxu1 %v644_v2  ;;  %s698_s25 = scalar_lea.vmem %s465_s24, 1024  ;;  %p703_p11 = scmp.lt.s32.totalorder %s465_s24, %s465_s24 }
  0x24   :  { %p699_p10 = scmp.ne.s32.totalorder %s465_s24, %s698_s25  ;;  %p704_p12 = scmp.lt.s32.totalorder %s698_s25, %s698_s25 }
  0x26   :  { %594 = vmatpush3.bf16.msra.mxu0 %v644_v2  ;;  %631 = vmatpush3.bf16.msra.mxu1 %v644_v2  ;;  %p705_p13 = por %p704_p12, %p703_p11 }
  0x27   :  { %595 = vmatprep.subr.bf16.mxu0 %v645_v3  ;;  %624 = vmatprep.subr.bf16.mxu1 %v645_v3 }
  0x28   :  { %p706_p0 = pnand %p705_p13, %p699_p10 }
  0x2a   :  { %596 = vmatpush3.bf16.msra.mxu0 %v645_v3  ;;  %632 = vmatpush3.bf16.msra.mxu1 %v645_v3 }
  0x2b   :  { %597 = vmatprep.subr.bf16.mxu0 %v646_v6  ;;  %625 = vmatprep.subr.bf16.mxu1 %v646_v6 }
  0x2e   :  { %598 = vmatpush3.bf16.msra.mxu0 %v646_v6  ;;  %633 = vmatpush3.bf16.msra.mxu1 %v646_v6 }
  0x2f   :  { %599 = vmatprep.subr.bf16.mxu0 %v647_v7  ;;  %626 = vmatprep.subr.bf16.mxu1 %v647_v7 }
  0x32   :  { %600 = vmatpush3.bf16.msra.mxu0 %v647_v7  ;;  %634 = vmatpush3.bf16.msra.mxu1 %v647_v7 }
  0x33   :  { %601 = vmatprep.subr.bf16.mxu0 %v648_v8  ;;  %627 = vmatprep.subr.bf16.mxu1 %v648_v8 }
  0x36   :  { %602 = vmatpush3.bf16.msra.mxu0 %v648_v8  ;;  %635 = vmatpush3.bf16.msra.mxu1 %v648_v8 }
  0x37   :  { %603 = vmatprep.subr.bf16.mxu0 %v649_v9  ;;  %628 = vmatprep.subr.bf16.mxu1 %v649_v9 }
  0x3a   :  { %604 = vmatpush3.bf16.msra.mxu0 %v649_v9  ;;  %636 = vmatpush3.bf16.msra.mxu1 %v649_v9 }
  0x3d   :  { %606 = vmatmul.mubr.bf16.vlgmr.msra.gmra.mxu0 %v652_v10  ;;  %614 = vmatmul.mubr.bf16.vlgmr.msra.gmra.mxu1 %v653_v11 }
  0x3e   :  { %609 = vmatprep.mubr.bf16.mxu0 %v654_v12  ;;  %617 = vmatprep.mubr.bf16.mxu1 %v655_v13 }
  0x45   :  { %610 = vmatmul.mubr.bf16.gmra.mxu0 %v656_v14  ;;  %618 = vmatmul.mubr.bf16.gmra.mxu1 %v657_v15 }
  0xfd   :  { %v607_v16 = vpop.f32.mrf.mxu0  ;;  %v615_v17 = vpop.f32.mrf.mxu1 }
  0xfe   :  { %v365_v23 = vadd.f32 %v607_v16, %v493_v18  ;;  %v373_v24 = vadd.f32 %v615_v17, %v493_v18 }
  0xff   :  { %v242_v19 = vpop.f32.mrf.mxu0  ;;  %v274_v20 = vpop.f32.mrf.mxu1 }
 0x100   :  { %v363_v27 = vadd.f32 %v493_v18, %v242_v19  ;;  %v371_v28 = vadd.f32 %v493_v18, %v274_v20 }
 0x101   :  { %v608_v21 = vpop.f32.mrf.mxu0  ;;  %v616_v22 = vpop.f32.mrf.mxu1 }
 0x102   :  { %v366_v25 = vadd.f32 %v608_v21, %v493_v18  ;;  %v374_v26 = vadd.f32 %v616_v22, %v493_v18 }
 0x103   :  { %v245_v29 = vpop.f32.mrf.mxu0  ;;  %v277_v30 = vpop.f32.mrf.mxu1 }
 0x104   :  { %v534_v31 = vpack.c.bf16 %v366_v25, %v365_v23  ;;  %v554_v32 = vpack.c.bf16 %v374_v26, %v373_v24  ;;  %v364_v33 = vadd.f32 %v493_v18, %v245_v29  ;;  %v372_v34 = vadd.f32 %v493_v18, %v277_v30 }
 0x105   :  { %v611_v35 = vpop.f32.mrf.mxu0  ;;  %v619_v36 = vpop.f32.mrf.mxu1 }
 0x106   :  { %566 = vst [vmem:[#allocation8 + $0x8] sm:$0xff] %v534_v31   ;;  %570 = vst [vmem:[#allocation8 + $0x28] sm:$0xff] %v554_v32   ;;  %v529_v37 = vpack.c.bf16 %v364_v33, %v363_v27  ;;  %v549_v38 = vpack.c.bf16 %v372_v34, %v371_v28  ;;  %v369_v43 = vadd.f32 %v611_v35, %v493_v18 }
 0x107   :  { %v258_v39 = vpop.f32.mrf.mxu0  ;;  %v290_v40 = vpop.f32.mrf.mxu1  ;;  %v377_v44 = vadd.f32 %v619_v36, %v493_v18 }
 0x108   :  { %530 = vst [vmem:[#allocation8] sm:$0xff] %v529_v37   ;;  %569 = vst [vmem:[#allocation8 + $0x20] sm:$0xff] %v549_v38   ;;  %v367_v47 = vadd.f32 %v493_v18, %v258_v39  ;;  %v375_v48 = vadd.f32 %v493_v18, %v290_v40 }
 0x109   :  { %v612_v41 = vpop.f32.mrf.mxu0  ;;  %v620_v42 = vpop.f32.mrf.mxu1 }
 0x10a   :  { %v370_v45 = vadd.f32 %v612_v41, %v493_v18  ;;  %v378_v46 = vadd.f32 %v620_v42, %v493_v18 }
 0x10b   :  { %v261_v49 = vpop.f32.mrf.mxu0  ;;  %v293_v50 = vpop.f32.mrf.mxu1 }
 0x10c   :  { %v544_v51 = vpack.c.bf16 %v370_v45, %v369_v43  ;;  %v564_v52 = vpack.c.bf16 %v378_v46, %v377_v44  ;;  %v368_v53 = vadd.f32 %v493_v18, %v261_v49  ;;  %v376_v54 = vadd.f32 %v493_v18, %v293_v50 }
 0x10e   :  { %568 = vst [vmem:[#allocation8 + $0x18] sm:$0xff] %v544_v51   ;;  %572 = vst [vmem:[#allocation8 + $0x38] sm:$0xff] %v564_v52   ;;  %v539_v55 = vpack.c.bf16 %v368_v53, %v367_v47  ;;  %v559_v56 = vpack.c.bf16 %v376_v54, %v375_v48 }
 0x110   :  { %567 = vst [vmem:[#allocation8 + $0x10] sm:$0xff] %v539_v55   ;;  %571 = vst [vmem:[#allocation8 + $0x30] sm:$0xff] %v559_v56  }
 0x111   :  { %709 = shalt.err (!%p706_p0)
}
 0x112   :  { %470 = dma.vmem_to_hbm [thread:$0]  %s465_s24, 1024, %s773_s3, [#allocation5], %s725_s15, %s725_s15, %s726_s16  }
 0x113   :  { %722 = dma.done.wait [#allocation5], 1024  }
 0x114   :  { %723 = vsyncadd [#allocation5], 4294966272 }
 0x115   :  { %474 = vsyncpa [#allocation4], 1 }
 0x116   :  { %475 = vsyncpa [#allocation7], 1 }
 0x117   :  { %476 = vsyncpa [#allocation5], 1 }

</bundles_post_ra>
